<compile_context>
chip_gen: v7x
topology: tpu7x:2x2x1
jax: 0.10.0
libtpu: 0.0.40
codegen_flags: <defaults>
</compile_context>

<pallas_src>
import functools

import numpy as np
import jax
import jax.numpy as jnp
from jax.experimental import pallas as pl
from jax.experimental.pallas import tpu as pltpu


# Scoped VMEM cap: ~56 MiB leaves headroom on v7x (64 MiB physical); well under
# v5e/v6e's 128 MiB.
VMEM_LIMIT_BYTES = 56 * 1024 * 1024
KV_TILE = 512          # flash-style KV tile for the online softmax


# ----------------------------------------------------------------------------
# Helpers
# ----------------------------------------------------------------------------
_BUFFERED = getattr(pl, "Buffered", None)


def _w_spec(shape):
    """Grid-invariant weight spec; single-buffered (its block index never changes)."""
    n = len(shape)
    idx = lambda *args, _n=n: (0,) * _n
    if _BUFFERED is not None:
        try:
            return pl.BlockSpec(shape, idx, pipeline_mode=_BUFFERED(1))
        except TypeError:          # very old jax without pipeline_mode kwarg
            pass
    return pl.BlockSpec(shape, idx)


def _layernorm(y, g, b, eps):
    """LayerNorm over last dim; y and statistics in f32."""
    mean = jnp.mean(y, axis=-1, keepdims=True)
    var = jnp.mean(jnp.square(y - mean), axis=-1, keepdims=True)
    return (y - mean) * jax.lax.rsqrt(var + eps) * g + b


# ----------------------------------------------------------------------------
# Fused FFT block kernel:
#   [+PE] -> wide QKV proj -> MHA (online softmax) -> out proj -> +res -> LN
#   -> conv1+ReLU -> conv2 -> +res -> LN -> [optional fused mel proj, stored
#   transposed (n_mels, T)]
# ----------------------------------------------------------------------------
def _fft_block_kernel(*refs, n_heads, K, eps, has_pe, has_mel):
    it = iter(refs)
    x_ref = next(it)
    pe_ref = next(it) if has_pe else None
    wqkv_ref = next(it); bqkv_ref = next(it)
    wo_ref = next(it); bo_ref = next(it)
    ln1g_ref = next(it); ln1b_ref = next(it)
    cw1_ref = next(it); cb1_ref = next(it)
    cw2_ref = next(it); cb2_ref = next(it)
    ln2g_ref = next(it); ln2b_ref = next(it)
    melw_ref = next(it) if has_mel else None
    melb_ref = next(it) if has_mel else None
    o_ref = next(it)
    xpad_ref = next(it); hpad_ref = next(it)

    T, D = x_ref.shape[1], x_ref.shape[2]
    C = cb1_ref.shape[1]
    dh = D // n_heads
    scale = 1.0 / float(np.sqrt(dh))
    pad_l = (K - 1) // 2
    pad_r = K - 1 - pad_l

    # ---- load, fold positional encoding, keep residual in f32 ---------------
    x = x_ref[0].astype(jnp.float32)                       # (T, D)
    if has_pe:
        x = x + pe_ref[...]
    xb = x.astype(jnp.bfloat16)

    # ---- one wide QKV projection: (T, D) @ (D, 3D) --------------------------
    qkv = jnp.dot(xb, wqkv_ref[...],
                  preferred_element_type=jnp.float32) + bqkv_ref[...]

    # ---- per-head attention with online (flash-style) softmax over KV tiles -
    head_outs = []
    for h in range(n_heads):
        q = qkv[:, h * dh:(h + 1) * dh]
        kk = qkv[:, D + h * dh:D + (h + 1) * dh]
        vv = qkv[:, 2 * D + h * dh:2 * D + (h + 1) * dh]
        qb = (q * scale).astype(jnp.bfloat16)
        m = l = acc = None
        for s0 in range(0, T, KV_TILE):
            tk = min(KV_TILE, T - s0)
            kt = kk[s0:s0 + tk].astype(jnp.bfloat16)
            vt = vv[s0:s0 + tk].astype(jnp.bfloat16)
            s = jax.lax.dot_general(qb, kt, (((1,), (1,)), ((), ())),
                                    preferred_element_type=jnp.float32)  # (T, tk)
            if m is None:                                   # first tile: plain softmax
                m = jnp.max(s, axis=-1, keepdims=True)
                p = jnp.exp(s - m)
                l = jnp.sum(p, axis=-1, keepdims=True)
                acc = jnp.dot(p.astype(jnp.bfloat16), vt,
                              preferred_element_type=jnp.float32)
            else:                                           # online rescale
                m_new = jnp.maximum(m, jnp.max(s, axis=-1, keepdims=True))
                alpha = jnp.exp(m - m_new)
                p = jnp.exp(s - m_new)
                l = alpha * l + jnp.sum(p, axis=-1, keepdims=True)
                acc = alpha * acc + jnp.dot(p.astype(jnp.bfloat16), vt,
                                            preferred_element_type=jnp.float32)
                m = m_new
        head_outs.append(acc * pl.reciprocal(l, approx=True))  # (T, dh)

    # ---- out-projection ------------------------------------------------------
    wo = wo_ref[...]                                        # (D, D) bf16
    if dh % 128 == 0:
        # production: heads are lane-aligned -> concat + one (T,D)@(D,D) matmul
        o_cat = jnp.concatenate([ho.astype(jnp.bfloat16) for ho in head_outs],
                                axis=-1)
        a = jnp.dot(o_cat, wo, preferred_element_type=jnp.float32) + bo_ref[...]
    else:
        # tiny dh: fold per head (attn @ Wo == sum_h o_h @ Wo[h*dh:(h+1)*dh])
        a = jnp.zeros((T, D), jnp.float32) + bo_ref[...]
        for h, ho in enumerate(head_outs):
            a = a + jnp.dot(ho.astype(jnp.bfloat16), wo[h * dh:(h + 1) * dh, :],
                            preferred_element_type=jnp.float32)

    # ---- residual + layernorm 1 ----------------------------------------------
    x1 = _layernorm(x + a, ln1g_ref[...], ln1b_ref[...], eps)   # (T, D) f32

    # ---- conv FFN: conv1 + ReLU + conv2 (bf16 pad scratch, halo-only zeroing) -
    if pad_l:
        xpad_ref[pl.ds(0, pad_l), :] = jnp.zeros((pad_l, D), xpad_ref.dtype)
    if pad_r:
        xpad_ref[pl.ds(pad_l + T, pad_r), :] = jnp.zeros((pad_r, D), xpad_ref.dtype)
    xpad_ref[pl.ds(pad_l, T), :] = x1.astype(xpad_ref.dtype)
    h1 = jnp.zeros((T, C), jnp.float32) + cb1_ref[...]
    for tap in range(K):                                    # K shifted matmuls
        h1 = h1 + jnp.dot(xpad_ref[pl.ds(tap, T), :], cw1_ref[tap],
                          preferred_element_type=jnp.float32)
    h1 = jnp.maximum(h1, 0.0)

    if pad_l:
        hpad_ref[pl.ds(0, pad_l), :] = jnp.zeros((pad_l, C), hpad_ref.dtype)
    if pad_r:
        hpad_ref[pl.ds(pad_l + T, pad_r), :] = jnp.zeros((pad_r, C), hpad_ref.dtype)
    hpad_ref[pl.ds(pad_l, T), :] = h1.astype(hpad_ref.dtype)
    g = jnp.zeros((T, D), jnp.float32) + cb2_ref[...]
    for tap in range(K):
        g = g + jnp.dot(hpad_ref[pl.ds(tap, T), :], cw2_ref[tap],
                        preferred_element_type=jnp.float32)

    # ---- residual + layernorm 2 ----------------------------------------------
    x2 = _layernorm(x1 + g, ln2g_ref[...], ln2b_ref[...], eps)

    if has_mel:
        # Fused mel projection, stored already transposed -> lane-dense along T.
        y = jax.lax.dot_general(melw_ref[...], x2.astype(jnp.bfloat16),
                                (((1,), (1,)), ((), ())),
                                preferred_element_type=jnp.float32)   # (n_mels, T)
        o_ref[0] = (y + melb_ref[...]).astype(o_ref.dtype)
    else:
        o_ref[0] = x2.astype(o_ref.dtype)


def fft_block(x, p, n_heads, pe=None, mel_w=None, mel_b=None):
    B, T, D = x.shape
    K, _, C = p['cw1'].shape
    Tp = T + K - 1
    has_pe = pe is not None
    has_mel = mel_w is not None

    io_spec = pl.BlockSpec((1, T, D), lambda b: (b, 0, 0))
    in_specs = [io_spec]
    args = [x]
    if has_pe:
        in_specs.append(_w_spec((T, D)))
        args.append(pe)

    w_items = [
        (p['wqkv'], (D, 3 * D)), (p['bqkv'], (1, 3 * D)),
        (p['wo'], (D, D)), (p['bo'], (1, D)),
        (p['ln1_g'], (1, D)), (p['ln1_b'], (1, D)),
        (p['cw1'], (K, D, C)), (p['cb1'], (1, C)),
        (p['cw2'], (K, C, D)), (p['cb2'], (1, D)),
        (p['ln2_g'], (1, D)), (p['ln2_b'], (1, D)),
    ]
    if has_mel:
        N = mel_w.shape[0]
        w_items += [(mel_w, (N, D)), (mel_b, (N, 1))]
        out_shape = jax.ShapeDtypeStruct((B, N, T), jnp.float32)
        out_spec = pl.BlockSpec((1, N, T), lambda b: (b, 0, 0))
    else:
        out_shape = jax.ShapeDtypeStruct((B, T, D), x.dtype)
        out_spec = io_spec
    for arr, shp in w_items:
        in_specs.append(_w_spec(shp))
        args.append(arr)

    kernel = functools.partial(_fft_block_kernel, n_heads=n_heads, K=K,
                               eps=1e-5, has_pe=has_pe, has_mel=has_mel)
    return pl.pallas_call(
        kernel,
        out_shape=out_shape,
        grid=(B,),
        in_specs=in_specs,
        out_specs=out_spec,
        scratch_shapes=[
            pltpu.VMEM((Tp, D), jnp.bfloat16),   # zero-padded x1 for conv1 (bf16)
            pltpu.VMEM((Tp, C), jnp.bfloat16),   # zero-padded hidden for conv2 (bf16)
        ],
        compiler_params=pltpu.CompilerParams(
            dimension_semantics=("parallel",),
            vmem_limit_bytes=VMEM_LIMIT_BYTES),
    )(*args)


# ----------------------------------------------------------------------------
# Fused duration predictor: (conv + ReLU + LN) x2 + linear + ReLU,
# output lane-dense as (B, 1, T).
# ----------------------------------------------------------------------------
def _duration_predictor_kernel(x_ref, cw1_ref, cb1_ref, ln1g_ref, ln1b_ref,
                               cw2_ref, cb2_ref, ln2g_ref, ln2b_ref,
                               lw_ref, lb_ref, o_ref, pad_ref, *, K, eps):
    T, D = x_ref.shape[1], x_ref.shape[2]
    pad_l = (K - 1) // 2
    pad_r = K - 1 - pad_l

    def conv_relu_ln(inp, cw_ref, cb, g, b):
        if pad_l:
            pad_ref[pl.ds(0, pad_l), :] = jnp.zeros((pad_l, D), pad_ref.dtype)
        if pad_r:
            pad_ref[pl.ds(pad_l + T, pad_r), :] = jnp.zeros((pad_r, D), pad_ref.dtype)
        pad_ref[pl.ds(pad_l, T), :] = inp.astype(pad_ref.dtype)
        acc = jnp.zeros((T, D), jnp.float32) + cb
        for tap in range(K):
            acc = acc + jnp.dot(pad_ref[pl.ds(tap, T), :], cw_ref[tap],
                                preferred_element_type=jnp.float32)
        acc = jnp.maximum(acc, 0.0)
        return _layernorm(acc, g, b, eps)

    h = conv_relu_ln(x_ref[0].astype(jnp.float32), cw1_ref, cb1_ref[...],
                     ln1g_ref[...], ln1b_ref[...])
    h = conv_relu_ln(h, cw2_ref, cb2_ref[...], ln2g_ref[...], ln2b_ref[...])
    # (1, D) x (T, D) contracted on D -> (1, T): T lane-dense output.
    d = jax.lax.dot_general(lw_ref[...], h.astype(jnp.bfloat16),
                            (((1,), (1,)), ((), ())),
                            preferred_element_type=jnp.float32) + lb_ref[...]
    o_ref[0] = jnp.maximum(d, 0.0).astype(o_ref.dtype)      # F.relu fused here


def duration_predictor(x, p):
    B, T, D = x.shape
    K = p['cw1'].shape[0]
    Tp = T + K - 1
    kernel = functools.partial(_duration_predictor_kernel, K=K, eps=1e-5)
    out = pl.pallas_call(
        kernel,
        out_shape=jax.ShapeDtypeStruct((B, 1, T), jnp.float32),
        grid=(B,),
        in_specs=[
            pl.BlockSpec((1, T, D), lambda b: (b, 0, 0)),
            _w_spec((K, D, D)), _w_spec((1, D)),
            _w_spec((1, D)), _w_spec((1, D)),
            _w_spec((K, D, D)), _w_spec((1, D)),
            _w_spec((1, D)), _w_spec((1, D)),
            _w_spec((1, D)), _w_spec((1, 1)),
        ],
        out_specs=pl.BlockSpec((1, 1, T), lambda b: (b, 0, 0)),
        scratch_shapes=[pltpu.VMEM((Tp, D), jnp.bfloat16)],
        compiler_params=pltpu.CompilerParams(
            dimension_semantics=("parallel",),
            vmem_limit_bytes=VMEM_LIMIT_BYTES),
    )(x, p['cw1'], p['cb1'], p['ln1_g'], p['ln1_b'],
      p['cw2'], p['cb2'], p['ln2_g'], p['ln2_b'],
      p['lw'], p['lb'])
    return out.reshape(B, T)                                 # free reshape


# ----------------------------------------------------------------------------
# Glue: length regulator (data-dependent gather) and full forward pass
# ----------------------------------------------------------------------------
def length_regulate(x, duration, T_mel):
    """Repeat frame t duration[b, t] times along time, zero-pad to T_mel."""
    def one(xb, db):
        cum = jnp.cumsum(db)
        pos = jnp.arange(T_mel)
        idx = jnp.searchsorted(cum, pos, side='right')
        valid = pos < cum[-1]
        idx = jnp.clip(idx, 0, xb.shape[0] - 1)
        return xb[idx] * valid[:, None].astype(xb.dtype)

    return jax.vmap(one)(x, duration)


def fastspeech_forward(params, text, duration, T_mel):
    B, T = text.shape
    pe = params['pos_enc']
    if T > pe.shape[0] or T_mel > pe.shape[0]:
        raise ValueError("sequence length exceeds positional-encoding max_len")

    x = params['embedding'][text]                     # (B, T, D) bf16 gather (glue)

    # PE add is folded into the first block of each stack.
    for i, p in enumerate(params['phoneme_blocks']):
        x = fft_block(x, p, params['n_heads'],
                      pe=(pe[:T] if i == 0 else None))

    pred_dur = duration_predictor(x, params['duration_predictor'])   # (B, T), relu'd

    x = length_regulate(x, duration, T_mel)           # data-dependent gather (glue)

    mblocks = params['mel_blocks']
    mel = None
    for i, p in enumerate(mblocks):
        is_last = i == len(mblocks) - 1
        out = fft_block(x, p, params['n_heads'],
                        pe=(pe[:T_mel] if i == 0 else None),
                        mel_w=(params['mel_w'] if is_last else None),
                        mel_b=(params['mel_b'] if is_last else None))
        if is_last:
            mel = out                                  # (B, n_mels, T_mel) f32
        else:
            x = out
    return {'pred_mel': mel, 'pred_duration': pred_dur}


# ----------------------------------------------------------------------------
# Deterministic parameter construction
# ----------------------------------------------------------------------------
def make_params(key, *, max_len, vocab_size, pad_idx, n_blocks, n_heads,
                fft_kernel, lr_kernel, embed_dim, n_mels, conv_channels):
    keys = iter(jax.random.split(key, 512))
    D = embed_dim

    def nrm(shape, scale=0.05):
        return jax.random.normal(next(keys), shape, jnp.float32) * scale

    def nrm_bf16(shape, scale=0.05):
        return nrm(shape, scale).astype(jnp.bfloat16)   # bf16 matmul weights

    def zeros(shape):
        return jnp.zeros(shape, jnp.float32)

    def ones(shape):
        return jnp.ones(shape, jnp.float32)

    emb = nrm((vocab_size, D), 0.1).at[pad_idx].set(0.0).astype(jnp.bfloat16)

    pos = np.arange(max_len, dtype=np.float32)[:, None]
    div = np.exp(-np.log(10000.0) * np.arange(0, D, 2, dtype=np.float32) / D)
    pe = np.zeros((max_len, D), np.float32)
    pe[:, 0::2] = np.sin(pos * div)
    pe[:, 1::2] = np.cos(pos * div)

    def fft_block_params():
        return dict(
            # Wide packed QKV: columns [0:D]=Q, [D:2D]=K, [2D:3D]=V (heads contiguous).
            wqkv=nrm_bf16((D, 3 * D)),
            bqkv=zeros((1, 3 * D)),
            wo=nrm_bf16((D, D)),            # rows grouped per head
            bo=zeros((1, D)),
            ln1_g=ones((1, D)), ln1_b=zeros((1, D)),
            cw1=nrm_bf16((fft_kernel, D, conv_channels)),
            cb1=zeros((1, conv_channels)),
            cw2=nrm_bf16((fft_kernel, conv_channels, D)),
            cb2=zeros((1, D)),
            ln2_g=ones((1, D)), ln2_b=zeros((1, D)),
        )

    dp = dict(
        cw1=nrm_bf16((lr_kernel, D, D)), cb1=zeros((1, D)),
        ln1_g=ones((1, D)), ln1_b=zeros((1, D)),
        cw2=nrm_bf16((lr_kernel, D, D)), cb2=zeros((1, D)),
        ln2_g=ones((1, D)), ln2_b=zeros((1, D)),
        lw=nrm_bf16((1, D)), lb=zeros((1, 1)),
    )

    return dict(
        n_heads=n_heads,
        embedding=emb,
        pos_enc=jnp.asarray(pe),
        phoneme_blocks=[fft_block_params() for _ in range(n_blocks)],
        duration_predictor=dp,
        mel_blocks=[fft_block_params() for _ in range(n_blocks)],
        mel_w=nrm_bf16((n_mels, D)),        # stored (n_mels, D): in-kernel out is (n_mels, T)
        mel_b=zeros((n_mels, 1)),
    )


# ----------------------------------------------------------------------------
# Main
# ----------------------------------------------------------------------------
if __name__ == "__main__":
    key = jax.random.PRNGKey(0)
    B, T = 2, 8
    max_len, vocab_size, pad_idx = 64, 16, 0
    n_blocks, n_heads = 2, 2
    fft_kernel, lr_kernel = 3, 3
    embed_dim, n_mels, conv_channels = 32, 8, 64

    kp, kt, kd = jax.random.split(key, 3)
    params = make_params(
        kp, max_len=max_len, vocab_size=vocab_size, pad_idx=pad_idx,
        n_blocks=n_blocks, n_heads=n_heads, fft_kernel=fft_kernel,
        lr_kernel=lr_kernel, embed_dim=embed_dim, n_mels=n_mels,
        conv_channels=conv_channels)

    text = jax.random.randint(kt, (B, T), 1, vocab_size, dtype=jnp.int32)
    duration = jax.random.randint(kd, (B, T), 1, 4, dtype=jnp.int32)
    # Static target mel length = max expanded length in the batch.
    # TODO(synk): bucket T_mel to a few static sizes in serving to avoid recompiles.
    T_mel = int(jnp.max(jnp.sum(duration, axis=1)))

    out = fastspeech_forward(params, text, duration, T_mel)
    jax.block_until_ready(out)

    assert out['pred_mel'].shape == (B, n_mels, T_mel), out['pred_mel'].shape
    assert out['pred_duration'].shape == (B, T), out['pred_duration'].shape
    assert out['pred_mel'].dtype == jnp.float32
    print("KERNEL_OK")
</pallas_src>

<mosaic_0001>
module attributes {stable_mosaic.version = 11 : i64} {
  func.func @_fft_block_kernel(%arg0: i32, %arg1: memref<1x8x32xbf16, #tpu.memory_space<vmem>>, %arg2: memref<8x32xf32, #tpu.memory_space<vmem>>, %arg3: memref<32x96xbf16, #tpu.memory_space<vmem>>, %arg4: memref<1x96xf32, #tpu.memory_space<vmem>>, %arg5: memref<32x32xbf16, #tpu.memory_space<vmem>>, %arg6: memref<1x32xf32, #tpu.memory_space<vmem>>, %arg7: memref<1x32xf32, #tpu.memory_space<vmem>>, %arg8: memref<1x32xf32, #tpu.memory_space<vmem>>, %arg9: memref<3x32x64xbf16, #tpu.memory_space<vmem>>, %arg10: memref<1x64xf32, #tpu.memory_space<vmem>>, %arg11: memref<3x64x32xbf16, #tpu.memory_space<vmem>>, %arg12: memref<1x32xf32, #tpu.memory_space<vmem>>, %arg13: memref<1x32xf32, #tpu.memory_space<vmem>>, %arg14: memref<1x32xf32, #tpu.memory_space<vmem>>, %arg15: memref<1x8x32xbf16, #tpu.memory_space<vmem>>, %arg16: memref<10x32xbf16, #tpu.memory_space<vmem>>, %arg17: memref<10x64xbf16, #tpu.memory_space<vmem>>) attributes {dimension_semantics = [#tpu.dimension_semantics<parallel>], iteration_bounds = array<i64: 2>, scalar_prefetch = 0 : i64, scratch_operands = 2 : i64, tpu.core_type = #tpu.core_type<tc>, window_params = [{transform_indices = @transform_0, window_bounds = array<i64: 1, 8, 32>}, {pipeline_mode = #tpu.pipeline_mode<synchronous>, transform_indices = @transform_1, window_bounds = array<i64: 8, 32>}, {pipeline_mode = #tpu.pipeline_mode<synchronous>, transform_indices = @transform_2, window_bounds = array<i64: 32, 96>}, {pipeline_mode = #tpu.pipeline_mode<synchronous>, transform_indices = @transform_3, window_bounds = array<i64: 1, 96>}, {pipeline_mode = #tpu.pipeline_mode<synchronous>, transform_indices = @transform_4, window_bounds = array<i64: 32, 32>}, {pipeline_mode = #tpu.pipeline_mode<synchronous>, transform_indices = @transform_5, window_bounds = array<i64: 1, 32>}, {pipeline_mode = #tpu.pipeline_mode<synchronous>, transform_indices = @transform_6, window_bounds = array<i64: 1, 32>}, {pipeline_mode = #tpu.pipeline_mode<synchronous>, transform_indices = @transform_7, window_bounds = array<i64: 1, 32>}, {pipeline_mode = #tpu.pipeline_mode<synchronous>, transform_indices = @transform_8, window_bounds = array<i64: 3, 32, 64>}, {pipeline_mode = #tpu.pipeline_mode<synchronous>, transform_indices = @transform_9, window_bounds = array<i64: 1, 64>}, {pipeline_mode = #tpu.pipeline_mode<synchronous>, transform_indices = @transform_10, window_bounds = array<i64: 3, 64, 32>}, {pipeline_mode = #tpu.pipeline_mode<synchronous>, transform_indices = @transform_11, window_bounds = array<i64: 1, 32>}, {pipeline_mode = #tpu.pipeline_mode<synchronous>, transform_indices = @transform_12, window_bounds = array<i64: 1, 32>}, {pipeline_mode = #tpu.pipeline_mode<synchronous>, transform_indices = @transform_13, window_bounds = array<i64: 1, 32>}, {transform_indices = @transform_14, window_bounds = array<i64: 1, 8, 32>}]} {
    %c0 = arith.constant 0 : index
    %c0_0 = arith.constant 0 : index
    %c0_1 = arith.constant 0 : index
    %0 = vector.load %arg1[%c0, %c0_0, %c0_1] : memref<1x8x32xbf16, #tpu.memory_space<vmem>>, vector<1x8x32xbf16>
    %1 = vector.shape_cast %0 : vector<1x8x32xbf16> to vector<8x32xbf16>
    %2 = arith.extf %1 : vector<8x32xbf16> to vector<8x32xf32>
    %c0_2 = arith.constant 0 : index
    %c0_3 = arith.constant 0 : index
    %3 = vector.load %arg2[%c0_2, %c0_3] : memref<8x32xf32, #tpu.memory_space<vmem>>, vector<8x32xf32>
    %4 = arith.addf %2, %3 : vector<8x32xf32>
    %5 = arith.truncf %4 : vector<8x32xf32> to vector<8x32xbf16>
    %c0_4 = arith.constant 0 : index
    %c0_5 = arith.constant 0 : index
    %6 = vector.load %arg3[%c0_4, %c0_5] : memref<32x96xbf16, #tpu.memory_space<vmem>>, vector<32x96xbf16>
    %cst = arith.constant dense<0.000000e+00> : vector<8x96xf32>
    %7 = tpu.matmul %5, %6, %cst {dimension_numbers = #tpu.dot_dimension_numbers<[1], [0], [0], [1], [0, 0, 1, 1], [], []>} : vector<8x32xbf16>, vector<32x96xbf16>, vector<8x96xf32> -> vector<8x96xf32>
    %c0_6 = arith.constant 0 : index
    %c0_7 = arith.constant 0 : index
    %8 = vector.load %arg4[%c0_6, %c0_7] : memref<1x96xf32, #tpu.memory_space<vmem>>, vector<1x96xf32>
    %9 = vector.broadcast %8 : vector<1x96xf32> to vector<8x96xf32>
    %10 = arith.addf %7, %9 : vector<8x96xf32>
    %11 = vector.extract_strided_slice %10 {offsets = [0, 0], sizes = [8, 16], strides = [1, 1]} : vector<8x96xf32> to vector<8x16xf32>
    %12 = vector.extract_strided_slice %10 {offsets = [0, 32], sizes = [8, 16], strides = [1, 1]} : vector<8x96xf32> to vector<8x16xf32>
    %13 = vector.extract_strided_slice %10 {offsets = [0, 64], sizes = [8, 16], strides = [1, 1]} : vector<8x96xf32> to vector<8x16xf32>
    %cst_8 = arith.constant 2.500000e-01 : f32
    %14 = vector.broadcast %cst_8 : f32 to vector<8x16xf32>
    %15 = arith.mulf %11, %14 : vector<8x16xf32>
    %16 = arith.truncf %15 : vector<8x16xf32> to vector<8x16xbf16>
    %17 = arith.truncf %12 : vector<8x16xf32> to vector<8x16xbf16>
    %18 = arith.truncf %13 : vector<8x16xf32> to vector<8x16xbf16>
    %cst_9 = arith.constant dense<0.000000e+00> : vector<8x8xf32>
    %19 = tpu.matmul %16, %17, %cst_9 {dimension_numbers = #tpu.dot_dimension_numbers<[1], [1], [0], [0], [0, 0, 1, 0], [], []>} : vector<8x16xbf16>, vector<8x16xbf16>, vector<8x8xf32> -> vector<8x8xf32>
    %cst_10 = arith.constant dense<0xFF800000> : vector<8xf32>
    %20 = vector.multi_reduction <maximumf>, %19, %cst_10 [1] : vector<8x8xf32> to vector<8xf32>
    %21 = vector.shape_cast %20 : vector<8xf32> to vector<8x1xf32>
    %22 = vector.broadcast %21 : vector<8x1xf32> to vector<8x8xf32>
    %23 = arith.subf %19, %22 : vector<8x8xf32>
    %24 = math.exp %23 : vector<8x8xf32>
    %cst_11 = arith.constant dense<0.000000e+00> : vector<8xf32>
    %25 = vector.multi_reduction <add>, %24, %cst_11 [1] : vector<8x8xf32> to vector<8xf32>
    %26 = vector.shape_cast %25 : vector<8xf32> to vector<8x1xf32>
    %27 = arith.truncf %24 : vector<8x8xf32> to vector<8x8xbf16>
    %cst_12 = arith.constant dense<0.000000e+00> : vector<8x16xf32>
    %28 = tpu.matmul %27, %18, %cst_12 {dimension_numbers = #tpu.dot_dimension_numbers<[1], [0], [0], [1], [0, 0, 1, 1], [], []>} : vector<8x8xbf16>, vector<8x16xbf16>, vector<8x16xf32> -> vector<8x16xf32>
    %29 = tpu.reciprocal %26 {approx = true} : vector<8x1xf32> -> vector<8x1xf32>
    %30 = vector.broadcast %29 : vector<8x1xf32> to vector<8x16xf32>
    %31 = arith.mulf %28, %30 : vector<8x16xf32>
    %32 = vector.extract_strided_slice %10 {offsets = [0, 16], sizes = [8, 16], strides = [1, 1]} : vector<8x96xf32> to vector<8x16xf32>
    %33 = vector.extract_strided_slice %10 {offsets = [0, 48], sizes = [8, 16], strides = [1, 1]} : vector<8x96xf32> to vector<8x16xf32>
    %34 = vector.extract_strided_slice %10 {offsets = [0, 80], sizes = [8, 16], strides = [1, 1]} : vector<8x96xf32> to vector<8x16xf32>
    %cst_13 = arith.constant 2.500000e-01 : f32
    %35 = vector.broadcast %cst_13 : f32 to vector<8x16xf32>
    %36 = arith.mulf %32, %35 : vector<8x16xf32>
    %37 = arith.truncf %36 : vector<8x16xf32> to vector<8x16xbf16>
    %38 = arith.truncf %33 : vector<8x16xf32> to vector<8x16xbf16>
    %39 = arith.truncf %34 : vector<8x16xf32> to vector<8x16xbf16>
    %cst_14 = arith.constant dense<0.000000e+00> : vector<8x8xf32>
    %40 = tpu.matmul %37, %38, %cst_14 {dimension_numbers = #tpu.dot_dimension_numbers<[1], [1], [0], [0], [0, 0, 1, 0], [], []>} : vector<8x16xbf16>, vector<8x16xbf16>, vector<8x8xf32> -> vector<8x8xf32>
    %cst_15 = arith.constant dense<0xFF800000> : vector<8xf32>
    %41 = vector.multi_reduction <maximumf>, %40, %cst_15 [1] : vector<8x8xf32> to vector<8xf32>
    %42 = vector.shape_cast %41 : vector<8xf32> to vector<8x1xf32>
    %43 = vector.broadcast %42 : vector<8x1xf32> to vector<8x8xf32>
    %44 = arith.subf %40, %43 : vector<8x8xf32>
    %45 = math.exp %44 : vector<8x8xf32>
    %cst_16 = arith.constant dense<0.000000e+00> : vector<8xf32>
    %46 = vector.multi_reduction <add>, %45, %cst_16 [1] : vector<8x8xf32> to vector<8xf32>
    %47 = vector.shape_cast %46 : vector<8xf32> to vector<8x1xf32>
    %48 = arith.truncf %45 : vector<8x8xf32> to vector<8x8xbf16>
    %cst_17 = arith.constant dense<0.000000e+00> : vector<8x16xf32>
    %49 = tpu.matmul %48, %39, %cst_17 {dimension_numbers = #tpu.dot_dimension_numbers<[1], [0], [0], [1], [0, 0, 1, 1], [], []>} : vector<8x8xbf16>, vector<8x16xbf16>, vector<8x16xf32> -> vector<8x16xf32>
    %50 = tpu.reciprocal %47 {approx = true} : vector<8x1xf32> -> vector<8x1xf32>
    %51 = vector.broadcast %50 : vector<8x1xf32> to vector<8x16xf32>
    %52 = arith.mulf %49, %51 : vector<8x16xf32>
    %c0_18 = arith.constant 0 : index
    %c0_19 = arith.constant 0 : index
    %53 = vector.load %arg5[%c0_18, %c0_19] : memref<32x32xbf16, #tpu.memory_space<vmem>>, vector<32x32xbf16>
    %cst_20 = arith.constant 0.000000e+00 : f32
    %54 = vector.broadcast %cst_20 : f32 to vector<8x32xf32>
    %c0_21 = arith.constant 0 : index
    %c0_22 = arith.constant 0 : index
    %55 = vector.load %arg6[%c0_21, %c0_22] : memref<1x32xf32, #tpu.memory_space<vmem>>, vector<1x32xf32>
    %56 = vector.broadcast %55 : vector<1x32xf32> to vector<8x32xf32>
    %57 = arith.addf %54, %56 : vector<8x32xf32>
    %58 = arith.truncf %31 : vector<8x16xf32> to vector<8x16xbf16>
    %59 = vector.extract_strided_slice %53 {offsets = [0, 0], sizes = [16, 32], strides = [1, 1]} : vector<32x32xbf16> to vector<16x32xbf16>
    %cst_23 = arith.constant dense<0.000000e+00> : vector<8x32xf32>
    %60 = tpu.matmul %58, %59, %cst_23 {dimension_numbers = #tpu.dot_dimension_numbers<[1], [0], [0], [1], [0, 0, 1, 1], [], []>} : vector<8x16xbf16>, vector<16x32xbf16>, vector<8x32xf32> -> vector<8x32xf32>
    %61 = arith.addf %57, %60 : vector<8x32xf32>
    %62 = arith.truncf %52 : vector<8x16xf32> to vector<8x16xbf16>
    %63 = vector.extract_strided_slice %53 {offsets = [16, 0], sizes = [16, 32], strides = [1, 1]} : vector<32x32xbf16> to vector<16x32xbf16>
    %cst_24 = arith.constant dense<0.000000e+00> : vector<8x32xf32>
    %64 = tpu.matmul %62, %63, %cst_24 {dimension_numbers = #tpu.dot_dimension_numbers<[1], [0], [0], [1], [0, 0, 1, 1], [], []>} : vector<8x16xbf16>, vector<16x32xbf16>, vector<8x32xf32> -> vector<8x32xf32>
    %65 = arith.addf %61, %64 : vector<8x32xf32>
    %66 = arith.addf %4, %65 : vector<8x32xf32>
    %c0_25 = arith.constant 0 : index
    %c0_26 = arith.constant 0 : index
    %67 = vector.load %arg7[%c0_25, %c0_26] : memref<1x32xf32, #tpu.memory_space<vmem>>, vector<1x32xf32>
    %c0_27 = arith.constant 0 : index
    %c0_28 = arith.constant 0 : index
    %68 = vector.load %arg8[%c0_27, %c0_28] : memref<1x32xf32, #tpu.memory_space<vmem>>, vector<1x32xf32>
    %cst_29 = arith.constant dense<0.000000e+00> : vector<8xf32>
    %69 = vector.multi_reduction <add>, %66, %cst_29 [1] : vector<8x32xf32> to vector<8xf32>
    %70 = vector.shape_cast %69 : vector<8xf32> to vector<8x1xf32>
    %cst_30 = arith.constant 3.200000e+01 : f32
    %71 = vector.broadcast %cst_30 : f32 to vector<8x1xf32>
    %72 = arith.divf %70, %71 : vector<8x1xf32>
    %73 = vector.broadcast %72 : vector<8x1xf32> to vector<8x32xf32>
    %74 = arith.subf %66, %73 : vector<8x32xf32>
    %75 = arith.mulf %74, %74 : vector<8x32xf32>
    %cst_31 = arith.constant dense<0.000000e+00> : vector<8xf32>
    %76 = vector.multi_reduction <add>, %75, %cst_31 [1] : vector<8x32xf32> to vector<8xf32>
    %77 = vector.shape_cast %76 : vector<8xf32> to vector<8x1xf32>
    %cst_32 = arith.constant 3.200000e+01 : f32
    %78 = vector.broadcast %cst_32 : f32 to vector<8x1xf32>
    %79 = arith.divf %77, %78 : vector<8x1xf32>
    %80 = vector.broadcast %72 : vector<8x1xf32> to vector<8x32xf32>
    %81 = arith.subf %66, %80 : vector<8x32xf32>
    %cst_33 = arith.constant 9.99999974E-6 : f32
    %82 = vector.broadcast %cst_33 : f32 to vector<8x1xf32>
    %83 = arith.addf %79, %82 : vector<8x1xf32>
    %84 = math.rsqrt %83 : vector<8x1xf32>
    %85 = vector.broadcast %84 : vector<8x1xf32> to vector<8x32xf32>
    %86 = arith.mulf %81, %85 : vector<8x32xf32>
    %87 = vector.broadcast %67 : vector<1x32xf32> to vector<8x32xf32>
    %88 = arith.mulf %86, %87 : vector<8x32xf32>
    %89 = vector.broadcast %68 : vector<1x32xf32> to vector<8x32xf32>
    %90 = arith.addf %88, %89 : vector<8x32xf32>
    %cst_34 = arith.constant 0.000000e+00 : bf16
    %91 = vector.broadcast %cst_34 : bf16 to vector<1x32xbf16>
    %c0_35 = arith.constant 0 : index
    %c0_36 = arith.constant 0 : index
    %92 = vector.load %arg16[%c0_35, %c0_36] : memref<10x32xbf16, #tpu.memory_space<vmem>>, vector<1x32xbf16>
    tpu.vector_store %arg16[%c0_35, %c0_36], %91 {strides = array<i32>} : memref<10x32xbf16, #tpu.memory_space<vmem>>, vector<1x32xbf16>,
    %cst_37 = arith.constant 0.000000e+00 : bf16
    %93 = vector.broadcast %cst_37 : bf16 to vector<1x32xbf16>
    %c9 = arith.constant 9 : index
    %c0_38 = arith.constant 0 : index
    %94 = vector.load %arg16[%c9, %c0_38] : memref<10x32xbf16, #tpu.memory_space<vmem>>, vector<1x32xbf16>
    tpu.vector_store %arg16[%c9, %c0_38], %93 {strides = array<i32>} : memref<10x32xbf16, #tpu.memory_space<vmem>>, vector<1x32xbf16>,
    %95 = arith.truncf %90 : vector<8x32xf32> to vector<8x32xbf16>
    %c1 = arith.constant 1 : index
    %c0_39 = arith.constant 0 : index
    %96 = vector.load %arg16[%c1, %c0_39] : memref<10x32xbf16, #tpu.memory_space<vmem>>, vector<8x32xbf16>
    tpu.vector_store %arg16[%c1, %c0_39], %95 {strides = array<i32>} : memref<10x32xbf16, #tpu.memory_space<vmem>>, vector<8x32xbf16>,
    %cst_40 = arith.constant 0.000000e+00 : f32
    %97 = vector.broadcast %cst_40 : f32 to vector<8x64xf32>
    %c0_41 = arith.constant 0 : index
    %c0_42 = arith.constant 0 : index
    %98 = vector.load %arg10[%c0_41, %c0_42] : memref<1x64xf32, #tpu.memory_space<vmem>>, vector<1x64xf32>
    %99 = vector.broadcast %98 : vector<1x64xf32> to vector<8x64xf32>
    %100 = arith.addf %97, %99 : vector<8x64xf32>
    %c0_43 = arith.constant 0 : index
    %c0_44 = arith.constant 0 : index
    %101 = vector.load %arg16[%c0_43, %c0_44] : memref<10x32xbf16, #tpu.memory_space<vmem>>, vector<8x32xbf16>
    %c0_45 = arith.constant 0 : index
    %c0_46 = arith.constant 0 : index
    %c0_47 = arith.constant 0 : index
    %102 = vector.load %arg9[%c0_45, %c0_46, %c0_47] : memref<3x32x64xbf16, #tpu.memory_space<vmem>>, vector<1x32x64xbf16>
    %103 = vector.shape_cast %102 : vector<1x32x64xbf16> to vector<32x64xbf16>
    %cst_48 = arith.constant dense<0.000000e+00> : vector<8x64xf32>
    %104 = tpu.matmul %101, %103, %cst_48 {dimension_numbers = #tpu.dot_dimension_numbers<[1], [0], [0], [1], [0, 0, 1, 1], [], []>} : vector<8x32xbf16>, vector<32x64xbf16>, vector<8x64xf32> -> vector<8x64xf32>
    %105 = arith.addf %100, %104 : vector<8x64xf32>
    %c1_49 = arith.constant 1 : index
    %c0_50 = arith.constant 0 : index
    %106 = vector.load %arg16[%c1_49, %c0_50] : memref<10x32xbf16, #tpu.memory_space<vmem>>, vector<8x32xbf16>
    %c1_51 = arith.constant 1 : index
    %c0_52 = arith.constant 0 : index
    %c0_53 = arith.constant 0 : index
    %107 = vector.load %arg9[%c1_51, %c0_52, %c0_53] : memref<3x32x64xbf16, #tpu.memory_space<vmem>>, vector<1x32x64xbf16>
    %108 = vector.shape_cast %107 : vector<1x32x64xbf16> to vector<32x64xbf16>
    %cst_54 = arith.constant dense<0.000000e+00> : vector<8x64xf32>
    %109 = tpu.matmul %106, %108, %cst_54 {dimension_numbers = #tpu.dot_dimension_numbers<[1], [0], [0], [1], [0, 0, 1, 1], [], []>} : vector<8x32xbf16>, vector<32x64xbf16>, vector<8x64xf32> -> vector<8x64xf32>
    %110 = arith.addf %105, %109 : vector<8x64xf32>
    %c2 = arith.constant 2 : index
    %c0_55 = arith.constant 0 : index
    %111 = vector.load %arg16[%c2, %c0_55] : memref<10x32xbf16, #tpu.memory_space<vmem>>, vector<8x32xbf16>
    %c2_56 = arith.constant 2 : index
    %c0_57 = arith.constant 0 : index
    %c0_58 = arith.constant 0 : index
    %112 = vector.load %arg9[%c2_56, %c0_57, %c0_58] : memref<3x32x64xbf16, #tpu.memory_space<vmem>>, vector<1x32x64xbf16>
    %113 = vector.shape_cast %112 : vector<1x32x64xbf16> to vector<32x64xbf16>
    %cst_59 = arith.constant dense<0.000000e+00> : vector<8x64xf32>
    %114 = tpu.matmul %111, %113, %cst_59 {dimension_numbers = #tpu.dot_dimension_numbers<[1], [0], [0], [1], [0, 0, 1, 1], [], []>} : vector<8x32xbf16>, vector<32x64xbf16>, vector<8x64xf32> -> vector<8x64xf32>
    %115 = arith.addf %110, %114 : vector<8x64xf32>
    %cst_60 = arith.constant 0.000000e+00 : f32
    %116 = vector.broadcast %cst_60 : f32 to vector<8x64xf32>
    %117 = arith.maximumf %115, %116 : vector<8x64xf32>
    %cst_61 = arith.constant 0.000000e+00 : bf16
    %118 = vector.broadcast %cst_61 : bf16 to vector<1x64xbf16>
    %c0_62 = arith.constant 0 : index
    %c0_63 = arith.constant 0 : index
    %119 = vector.load %arg17[%c0_62, %c0_63] : memref<10x64xbf16, #tpu.memory_space<vmem>>, vector<1x64xbf16>
    tpu.vector_store %arg17[%c0_62, %c0_63], %118 {strides = array<i32>} : memref<10x64xbf16, #tpu.memory_space<vmem>>, vector<1x64xbf16>,
    %cst_64 = arith.constant 0.000000e+00 : bf16
    %120 = vector.broadcast %cst_64 : bf16 to vector<1x64xbf16>
    %c9_65 = arith.constant 9 : index
    %c0_66 = arith.constant 0 : index
    %121 = vector.load %arg17[%c9_65, %c0_66] : memref<10x64xbf16, #tpu.memory_space<vmem>>, vector<1x64xbf16>
    tpu.vector_store %arg17[%c9_65, %c0_66], %120 {strides = array<i32>} : memref<10x64xbf16, #tpu.memory_space<vmem>>, vector<1x64xbf16>,
    %122 = arith.truncf %117 : vector<8x64xf32> to vector<8x64xbf16>
    %c1_67 = arith.constant 1 : index
    %c0_68 = arith.constant 0 : index
    %123 = vector.load %arg17[%c1_67, %c0_68] : memref<10x64xbf16, #tpu.memory_space<vmem>>, vector<8x64xbf16>
    tpu.vector_store %arg17[%c1_67, %c0_68], %122 {strides = array<i32>} : memref<10x64xbf16, #tpu.memory_space<vmem>>, vector<8x64xbf16>,
    %cst_69 = arith.constant 0.000000e+00 : f32
    %124 = vector.broadcast %cst_69 : f32 to vector<8x32xf32>
    %c0_70 = arith.constant 0 : index
    %c0_71 = arith.constant 0 : index
    %125 = vector.load %arg12[%c0_70, %c0_71] : memref<1x32xf32, #tpu.memory_space<vmem>>, vector<1x32xf32>
    %126 = vector.broadcast %125 : vector<1x32xf32> to vector<8x32xf32>
    %127 = arith.addf %124, %126 : vector<8x32xf32>
    %c0_72 = arith.constant 0 : index
    %c0_73 = arith.constant 0 : index
    %128 = vector.load %arg17[%c0_72, %c0_73] : memref<10x64xbf16, #tpu.memory_space<vmem>>, vector<8x64xbf16>
    %c0_74 = arith.constant 0 : index
    %c0_75 = arith.constant 0 : index
    %c0_76 = arith.constant 0 : index
    %129 = vector.load %arg11[%c0_74, %c0_75, %c0_76] : memref<3x64x32xbf16, #tpu.memory_space<vmem>>, vector<1x64x32xbf16>
    %130 = vector.shape_cast %129 : vector<1x64x32xbf16> to vector<64x32xbf16>
    %cst_77 = arith.constant dense<0.000000e+00> : vector<8x32xf32>
    %131 = tpu.matmul %128, %130, %cst_77 {dimension_numbers = #tpu.dot_dimension_numbers<[1], [0], [0], [1], [0, 0, 1, 1], [], []>} : vector<8x64xbf16>, vector<64x32xbf16>, vector<8x32xf32> -> vector<8x32xf32>
    %132 = arith.addf %127, %131 : vector<8x32xf32>
    %c1_78 = arith.constant 1 : index
    %c0_79 = arith.constant 0 : index
    %133 = vector.load %arg17[%c1_78, %c0_79] : memref<10x64xbf16, #tpu.memory_space<vmem>>, vector<8x64xbf16>
    %c1_80 = arith.constant 1 : index
    %c0_81 = arith.constant 0 : index
    %c0_82 = arith.constant 0 : index
    %134 = vector.load %arg11[%c1_80, %c0_81, %c0_82] : memref<3x64x32xbf16, #tpu.memory_space<vmem>>, vector<1x64x32xbf16>
    %135 = vector.shape_cast %134 : vector<1x64x32xbf16> to vector<64x32xbf16>
    %cst_83 = arith.constant dense<0.000000e+00> : vector<8x32xf32>
    %136 = tpu.matmul %133, %135, %cst_83 {dimension_numbers = #tpu.dot_dimension_numbers<[1], [0], [0], [1], [0, 0, 1, 1], [], []>} : vector<8x64xbf16>, vector<64x32xbf16>, vector<8x32xf32> -> vector<8x32xf32>
    %137 = arith.addf %132, %136 : vector<8x32xf32>
    %c2_84 = arith.constant 2 : index
    %c0_85 = arith.constant 0 : index
    %138 = vector.load %arg17[%c2_84, %c0_85] : memref<10x64xbf16, #tpu.memory_space<vmem>>, vector<8x64xbf16>
    %c2_86 = arith.constant 2 : index
    %c0_87 = arith.constant 0 : index
    %c0_88 = arith.constant 0 : index
    %139 = vector.load %arg11[%c2_86, %c0_87, %c0_88] : memref<3x64x32xbf16, #tpu.memory_space<vmem>>, vector<1x64x32xbf16>
    %140 = vector.shape_cast %139 : vector<1x64x32xbf16> to vector<64x32xbf16>
    %cst_89 = arith.constant dense<0.000000e+00> : vector<8x32xf32>
    %141 = tpu.matmul %138, %140, %cst_89 {dimension_numbers = #tpu.dot_dimension_numbers<[1], [0], [0], [1], [0, 0, 1, 1], [], []>} : vector<8x64xbf16>, vector<64x32xbf16>, vector<8x32xf32> -> vector<8x32xf32>
    %142 = arith.addf %137, %141 : vector<8x32xf32>
    %143 = arith.addf %90, %142 : vector<8x32xf32>
    %c0_90 = arith.constant 0 : index
    %c0_91 = arith.constant 0 : index
    %144 = vector.load %arg13[%c0_90, %c0_91] : memref<1x32xf32, #tpu.memory_space<vmem>>, vector<1x32xf32>
    %c0_92 = arith.constant 0 : index
    %c0_93 = arith.constant 0 : index
    %145 = vector.load %arg14[%c0_92, %c0_93] : memref<1x32xf32, #tpu.memory_space<vmem>>, vector<1x32xf32>
    %cst_94 = arith.constant dense<0.000000e+00> : vector<8xf32>
    %146 = vector.multi_reduction <add>, %143, %cst_94 [1] : vector<8x32xf32> to vector<8xf32>
    %147 = vector.shape_cast %146 : vector<8xf32> to vector<8x1xf32>
    %cst_95 = arith.constant 3.200000e+01 : f32
    %148 = vector.broadcast %cst_95 : f32 to vector<8x1xf32>
    %149 = arith.divf %147, %148 : vector<8x1xf32>
    %150 = vector.broadcast %149 : vector<8x1xf32> to vector<8x32xf32>
    %151 = arith.subf %143, %150 : vector<8x32xf32>
    %152 = arith.mulf %151, %151 : vector<8x32xf32>
    %cst_96 = arith.constant dense<0.000000e+00> : vector<8xf32>
    %153 = vector.multi_reduction <add>, %152, %cst_96 [1] : vector<8x32xf32> to vector<8xf32>
    %154 = vector.shape_cast %153 : vector<8xf32> to vector<8x1xf32>
    %cst_97 = arith.constant 3.200000e+01 : f32
    %155 = vector.broadcast %cst_97 : f32 to vector<8x1xf32>
    %156 = arith.divf %154, %155 : vector<8x1xf32>
    %157 = vector.broadcast %149 : vector<8x1xf32> to vector<8x32xf32>
    %158 = arith.subf %143, %157 : vector<8x32xf32>
    %cst_98 = arith.constant 9.99999974E-6 : f32
    %159 = vector.broadcast %cst_98 : f32 to vector<8x1xf32>
    %160 = arith.addf %156, %159 : vector<8x1xf32>
    %161 = math.rsqrt %160 : vector<8x1xf32>
    %162 = vector.broadcast %161 : vector<8x1xf32> to vector<8x32xf32>
    %163 = arith.mulf %158, %162 : vector<8x32xf32>
    %164 = vector.broadcast %144 : vector<1x32xf32> to vector<8x32xf32>
    %165 = arith.mulf %163, %164 : vector<8x32xf32>
    %166 = vector.broadcast %145 : vector<1x32xf32> to vector<8x32xf32>
    %167 = arith.addf %165, %166 : vector<8x32xf32>
    %168 = arith.truncf %167 : vector<8x32xf32> to vector<8x32xbf16>
    %c0_99 = arith.constant 0 : index
    %c0_100 = arith.constant 0 : index
    %c0_101 = arith.constant 0 : index
    %169 = vector.load %arg15[%c0_99, %c0_100, %c0_101] : memref<1x8x32xbf16, #tpu.memory_space<vmem>>, vector<1x8x32xbf16>
    %170 = vector.shape_cast %169 : vector<1x8x32xbf16> to vector<8x32xbf16>
    %171 = vector.shape_cast %168 : vector<8x32xbf16> to vector<1x8x32xbf16>
    tpu.vector_store %arg15[%c0_99, %c0_100, %c0_101], %171 {strides = array<i32>} : memref<1x8x32xbf16, #tpu.memory_space<vmem>>, vector<1x8x32xbf16>,
    return
  }
  func.func @transform_0(%arg0: i32) -> (i32, i32, i32) {
    %c0_i32 = arith.constant 0 : i32
    %c0_i32_0 = arith.constant 0 : i32
    %c0_i32_1 = arith.constant 0 : i32
    return %arg0, %c0_i32, %c0_i32_0 : i32, i32, i32
  }
  func.func @transform_1(%arg0: i32) -> (i32, i32) {
    %c0_i32 = arith.constant 0 : i32
    %c0_i32_0 = arith.constant 0 : i32
    %c0_i32_1 = arith.constant 0 : i32
    return %c0_i32, %c0_i32_0 : i32, i32
  }
  func.func @transform_2(%arg0: i32) -> (i32, i32) {
    %c0_i32 = arith.constant 0 : i32
    %c0_i32_0 = arith.constant 0 : i32
    %c0_i32_1 = arith.constant 0 : i32
    return %c0_i32, %c0_i32_0 : i32, i32
  }
  func.func @transform_3(%arg0: i32) -> (i32, i32) {
    %c0_i32 = arith.constant 0 : i32
    %c0_i32_0 = arith.constant 0 : i32
    %c0_i32_1 = arith.constant 0 : i32
    return %c0_i32, %c0_i32_0 : i32, i32
  }
  func.func @transform_4(%arg0: i32) -> (i32, i32) {
    %c0_i32 = arith.constant 0 : i32
    %c0_i32_0 = arith.constant 0 : i32
    %c0_i32_1 = arith.constant 0 : i32
    return %c0_i32, %c0_i32_0 : i32, i32
  }
  func.func @transform_5(%arg0: i32) -> (i32, i32) {
    %c0_i32 = arith.constant 0 : i32
    %c0_i32_0 = arith.constant 0 : i32
    %c0_i32_1 = arith.constant 0 : i32
    return %c0_i32, %c0_i32_0 : i32, i32
  }
  func.func @transform_6(%arg0: i32) -> (i32, i32) {
    %c0_i32 = arith.constant 0 : i32
    %c0_i32_0 = arith.constant 0 : i32
    %c0_i32_1 = arith.constant 0 : i32
    return %c0_i32, %c0_i32_0 : i32, i32
  }
  func.func @transform_7(%arg0: i32) -> (i32, i32) {
    %c0_i32 = arith.constant 0 : i32
    %c0_i32_0 = arith.constant 0 : i32
    %c0_i32_1 = arith.constant 0 : i32
    return %c0_i32, %c0_i32_0 : i32, i32
  }
  func.func @transform_8(%arg0: i32) -> (i32, i32, i32) {
    %c0_i32 = arith.constant 0 : i32
    %c0_i32_0 = arith.constant 0 : i32
    %c0_i32_1 = arith.constant 0 : i32
    %c0_i32_2 = arith.constant 0 : i32
    return %c0_i32, %c0_i32_0, %c0_i32_1 : i32, i32, i32
  }
  func.func @transform_9(%arg0: i32) -> (i32, i32) {
    %c0_i32 = arith.constant 0 : i32
    %c0_i32_0 = arith.constant 0 : i32
    %c0_i32_1 = arith.constant 0 : i32
    return %c0_i32, %c0_i32_0 : i32, i32
  }
  func.func @transform_10(%arg0: i32) -> (i32, i32, i32) {
    %c0_i32 = arith.constant 0 : i32
    %c0_i32_0 = arith.constant 0 : i32
    %c0_i32_1 = arith.constant 0 : i32
    %c0_i32_2 = arith.constant 0 : i32
    return %c0_i32, %c0_i32_0, %c0_i32_1 : i32, i32, i32
  }
  func.func @transform_11(%arg0: i32) -> (i32, i32) {
    %c0_i32 = arith.constant 0 : i32
    %c0_i32_0 = arith.constant 0 : i32
    %c0_i32_1 = arith.constant 0 : i32
    return %c0_i32, %c0_i32_0 : i32, i32
  }
  func.func @transform_12(%arg0: i32) -> (i32, i32) {
    %c0_i32 = arith.constant 0 : i32
    %c0_i32_0 = arith.constant 0 : i32
    %c0_i32_1 = arith.constant 0 : i32
    return %c0_i32, %c0_i32_0 : i32, i32
  }
  func.func @transform_13(%arg0: i32) -> (i32, i32) {
    %c0_i32 = arith.constant 0 : i32
    %c0_i32_0 = arith.constant 0 : i32
    %c0_i32_1 = arith.constant 0 : i32
    return %c0_i32, %c0_i32_0 : i32, i32
  }
  func.func @transform_14(%arg0: i32) -> (i32, i32, i32) {
    %c0_i32 = arith.constant 0 : i32
    %c0_i32_0 = arith.constant 0 : i32
    %c0_i32_1 = arith.constant 0 : i32
    return %arg0, %c0_i32, %c0_i32_0 : i32, i32, i32
  }
}

</mosaic_0001>

<bundles_post_ra>
// kernel: tpu_custom_call.1
= control target key start
LH: loop header
LB: loop body
LE: loop exit
PB: predicated region body
PF: predicated region fallthrough
CT: control target
= control target key end

     0   :  { %s2317_s0 = inlined_call_operand.vmem [shape: bf16[2,8,32], index: 0, kind: input, shape index: {}]   ;;  %s2318_s1 = inlined_call_operand.vmem [shape: f32[8,32], index: 1, kind: input, shape index: {}]   ;;  %s2319_s2 = inlined_call_operand.vmem [shape: bf16[32,96], index: 2, kind: input, shape index: {}]   ;;  %s2320_s3 = inlined_call_operand.vmem [shape: f32[1,96], index: 3, kind: input, shape index: {}]   ;;  %s2321_s4 = inlined_call_operand.vmem [shape: bf16[32,32], index: 4, kind: input, shape index: {}]   ;;  %s2322_s5 = inlined_call_operand.vmem [shape: f32[1,32], index: 5, kind: input, shape index: {}]   ;;  %s2323_s6 = inlined_call_operand.vmem [shape: f32[1,32], index: 6, kind: input, shape index: {}]   ;;  %s2324_s7 = inlined_call_operand.vmem [shape: f32[1,32], index: 7, kind: input, shape index: {}]   ;;  %s2325_s8 = inlined_call_operand.vmem [shape: bf16[3,32,64], index: 8, kind: input, shape index: {}]   ;;  %s2326_s9 = inlined_call_operand.vmem [shape: f32[1,64], index: 9, kind: input, shape index: {}]   ;;  %s2327_s10 = inlined_call_operand.vmem [shape: bf16[3,64,32], index: 10, kind: input, shape index: {}]   ;;  %s2328_s11 = inlined_call_operand.vmem [shape: f32[1,32], index: 11, kind: input, shape index: {}]   ;;  %s2329_s12 = inlined_call_operand.vmem [shape: f32[1,32], index: 12, kind: input, shape index: {}]   ;;  %s2330_s13 = inlined_call_operand.vmem [shape: f32[1,32], index: 13, kind: input, shape index: {}]   ;;  %s2331_s14 = inlined_call_operand.hbm [shape: bf16[2,8,32], index: 14, kind: output, shape index: {}]  }
   0x1   :  { %2332 = sst [smem:[#allocation7_spill]] %s2317_s0 }
   0x2   :  { %2333 = sst [smem:[#allocation8_spill]] %s2318_s1 }
   0x3   :  { %2334 = sst [smem:[#allocation9_spill]] %s2319_s2 }
   0x4   :  { %2335 = sst [smem:[#allocation10_spill]] %s2320_s3 }
   0x5   :  { %2336 = sst [smem:[#allocation11_spill]] %s2321_s4 }
   0x6   :  { %19 = vsyncpa [#allocation5], 0 }
   0x7   :  { %21 = vsyncpa [#allocation5 + $0x1], 0  ;;  %s2015_s29 = smov 0   ;;  %s2017_s30 = smov 0  }
   0x8   :  { %s2019_s15 = smov 0   ;;  %s2021_s16 = smov 0  }
   0x9 LB: > { %s2036_s17 = sadd.s32 4294967295, %s1930_s16   ;;  %s1547_s18 = sadd.s32 4294967294, %s1930_s16   ;;  %s1930_s16 = sphi %s2021_s16, %s2351_s16   ;;  %s1926_s15 = sphi %s2019_s15, %s2350_s15   ;;  %s1922_s30 = sphi %s2017_s30, %s2349_s30   ;;  %s1918_s29 = sphi %s2015_s29, %s2348_s29  }
   0xa   : > { %s2040_s19 = sadd.s32 1, %s1930_s16   ;;  %s333_s20 = sadd.s32 1, %s1926_s15 }
   0xb   : > { %s330_s21 = ssub.s32 %s1930_s16, %s2040_s19  ;;  %p343_p0 = scmp.ne.s32.totalorder %s1926_s15, %s1922_s30 }
   0xc   : > { %p331_p1 = scmp.eq.s32.totalorder %s330_s21, 0  ;;  %p344_p2 = scmp.eq.s32.totalorder %s2036_s17, 1 }
   0xd   : > { %p349_p3 = scmp.ne.s32.totalorder %s1922_s30, %s1918_s29  ;;  %p350_p4 = scmp.eq.s32.totalorder %s1547_s18, 1 }
   0xe   : > { %s2051_s22 = scalar_select %p331_p1, %s1926_s15, %s333_s20  }
   0xf   : > { %p2053_p5 = por %p344_p2, %p343_p0  ;;  %p2057_p6 = por %p350_p4, %p349_p3 }
  0x10   : > { %p1550_p7 = scmp.ge.s32.totalorder %s1930_s16, 1  ;;  %p414_p8 = scmp.lt.s32.totalorder %s1930_s16, 3 }
  0x12   : > { %p415_p9 = pnand %p1550_p7, %p414_p8 }
  0x13   : > { %s2339_s2 = sld [smem:[#allocation9_spill]] (!%p415_p9)  ;;  %v1932_v1 = vmov (!%p415_p9), 0.0   ;;  %vm1933_vm0 = vmmov (!%p415_p9), 0   ;;  %p459_p10 = scmp.lt.s32.totalorder (!%p415_p9), %s2036_s17, 1  ;;  %vm492_vm1 = vcmask (!%p415_p9), 261120   ;;  %vm542_vm2 = vcmask (!%p415_p9), 130048  }
  0x14   : > { %418 = sbr.rel (%p415_p9) target bundleno = 2339 (0x923), region = 76  ;;  %1671 = vmatprep.subr.bf16.mxu0 (!%p415_p9), %v1932_v1  ;;  %1679 = vmatprep.subr.bf16.mxu1 (!%p415_p9), %v1932_v1  ;;  %s2340_s1 = sld [smem:[#allocation8_spill]] (!%p415_p9)  ;;  %vm589_vm3 = vcmask (!%p415_p9), 64512   ;;  %vm605_vm4 = vcmask (!%p415_p9), 1043456   ;;  %vm907_vm5 = vcmask (!%p415_p9), 253952   ;;  %vm932_vm10 = vcmask (!%p415_p9), 257024  }
  0x15   : > { %1675 = vmatprep.mubr.msk.bf16.mxu0 (!%p415_p9), %vm1933_vm0, %v1932_v1  ;;  %1681 = vmatprep.mubr.msk.bf16.mxu1 (!%p415_p9), %vm1933_vm0, %v1932_v1  ;;  %s2341_s0 = sld [smem:[#allocation7_spill]] (!%p415_p9)  ;;  %s2342_s3 = sld [smem:[#allocation10_spill]] (!%p415_p9)  ;;  %vm908_vm6 = vsmask.f32 (!%p415_p9), 256  ;;  %vm913_vm7 = vsmask.f32 (!%p415_p9), 7938 }
  0x16   : > { %s1935_s25 = smov (!%p415_p9), 112   ;;  %s1936_s26 = smov (!%p415_p9), 80   ;;  %vm2137_vm8 = vmand (!%p415_p9), %vm907_vm5, %vm908_vm6  ;;  %vm1151_vm12 = vcmask (!%p415_p9), 516096   ;;  %vm1174_vm15 = vcmask (!%p415_p9), 519168  }
  0x17   : > { %s1937_s27 = smov (!%p415_p9), 48   ;;  %s2343_s4 = sld [smem:[#allocation11_spill]] (!%p415_p9)  ;;  %vm914_vm9 = vmand (!%p415_p9), %vm907_vm5, %vm913_vm7 }
  0x18   : > { %vm933_vm11 = vmand (!%p415_p9), %vm932_vm10, %vm913_vm7 }
  0x19   : > { %v1830_v0 = vld [vmem:[%s2339_s2] sm:$0xff] (!%p415_p9)   ;;  %v1831_v2 = vld [vmem:[%s2339_s2 + $0x8] sm:$0xff] (!%p415_p9)   ;;  %vm2193_vm13 = vmand (!%p415_p9), %vm1151_vm12, %vm908_vm6 }
  0x1a   : > { %1672 = vmatpush3.bf16.msra.mxu0 (!%p415_p9), %v1830_v0  ;;  %v466_v3 = vld [vmem:[%s2340_s1] sm:$0xff] (!%p415_p9)  ;;  %vm1156_vm14 = vmand (!%p415_p9), %vm1151_vm12, %vm913_vm7 }
  0x1b   : > { %1673 = vmatprep.subr.bf16.mxu0 %v1932_v1  ;;  %s460_s18 = scalar_select %p459_p10, %s2036_s17, 1  ;;  %v1553_v8 = vld [vmem:[%s2342_s3] ss:$0 sm:$0xff] }
  0x1d   : > { %s1552_s20 = sshll.u32 %s460_s18, 2  ;;  %v1832_v48 = vld [vmem:[%s2343_s4] sm:$0xff]   ;;  %v1833_v49 = vld [vmem:[%s2343_s4 + $0x8] sm:$0xff]  }
  0x1e   : > { %1674 = vmatpush3.bf16.msra.mxu0 %v1831_v2  ;;  %s462_s28 = scalar_lea.vmem %s2341_s0, %s1552_s20  ;;  %s1934_s20 = smov 96  }
  0x1f   : > { %1685 = vmatprep.subr.bf16.mxu0 %v1932_v1  ;;  %v464_v4 = vld [vmem:[%s462_s28] sm:$0xf]  ;;  %s1938_s28 = smov 64  }
  0x20   : > { %v465_v5 = vunpack.c.l.bf16 %v464_v4 }
  0x22   : > { %v2085_v6 = vadd.f32 %v466_v3, %v465_v5 }
  0x24   : > { %v468_v7 = vpack.c.bf16 %v2085_v6, %v2085_v6 }
  0x26   : > { %1676 = vmatmul.mubr.msk.bf16.vlgmr.msra.gmra.mrb[0].mxu0 %vm492_vm1, %v468_v7 }
  0x27   : > { %1687 = vmatprep.mubr.msk.bf16.mxu0 %vm1933_vm0, %v1932_v1 }
  0xf9   : > { %v530_v9 = vpop.f32.mrb[0].mxu0 }
  0xfa   : > { %v531_v10 = vadd.f32 %v1553_v8, %v530_v9  ;;  %v1677_v11 = vpop.f32.mrb[1].mxu0  ;;  %v1561_v8 = vld [vmem:[%s2322_s5] ss:$0 sm:$0xff] }
  0xfb   : > { %v533_v12 = vpop.f32.mrb[2].mxu0 }
  0xfc   : > { %v538_v13 = vpack.c.bf16 %v531_v10, %v531_v10  ;;  %v1678_v14 = vpop.f32.mrb[3].mxu0  ;;  %v536_v15 = vmul.f32 0.25, %v531_v10 }
  0xfe   : > { %540 = vrot.lane.b32.xlu0 %v538_v13, %s1934_s20  ;;  %v537_v16 = vpack.c.bf16 %v536_v15, %v536_v15 }
 0x100   : > { %652 = vrot.lane.b32.xlu1 %v537_v16, %s1935_s25  ;;  %s1627_s25 = sshll.u32 %s2036_s17, 6  ;;  %s1939_s17 = smov [#allocation4]  }
 0x101   : > { %s2274_s4 = scalar_lea.hbm %s2331_s14, %s1627_s25 }
 0x102   : > { %654 = vrot.lane.b32.xlu0 %v538_v13, %s1936_s26 }
 0x170   : > { %v541_v17 = vpop.permute.xlu0 %540 }
 0x171   : > { %v547_v18 = vsel %vm542_vm2, %v541_v17, 0  ;;  %v910_v17 = vld [vmem:[#allocation2] sm:$0x1] }
 0x172   : > { %1680 = vmatpush3.bf16.xpose.msra.mxu1 %v547_v18  ;;  %v653_v21 = vpop.permute.xlu1 %652 }
 0x173   : > { %1691 = vmatprep.subr.bf16.mxu1 %v1932_v1 }
 0x174   : > { %v655_v19 = vpop.permute.xlu0 %654 }
 0x175   : > { %v660_v20 = vsel %vm542_vm2, %v655_v19, 0  ;;  %v915_v19 = vld [vmem:[#allocation2 + $0x4] sm:$0x1] }
 0x179   : > { %1682 = vmatmul.mubr.msk.bf16.vlgmr.msra.gmra.mrb[0].mxu1 %vm542_vm2, %v537_v16 }
 0x17a   : > { %1692 = vmatpush3.bf16.xpose.msra.mxu1 %v660_v20  ;;  %1693 = vmatprep.mubr.msk.bf16.mxu1 %vm1933_vm0, %v1932_v1  ;;  %v911_v20 = vsel %vm2137_vm8, 0, %v910_v17 }
 0x17b   : > { %1703 = vmatprep.subr.bf16.mxu1 %v1932_v1  ;;  %912 = vst [vmem:[#allocation2] sm:$0x1] %v911_v20 }
 0x181   : > { %1694 = vmatmul.mubr.msk.bf16.vlgmr.msra.gmra.mrb[4].mxu1 %vm542_vm2, %v653_v21 }
 0x182   : > { %1705 = vmatprep.mubr.msk.bf16.mxu1 %vm1933_vm0, %v1932_v1  ;;  %1704 = vmatpush3.bf16.msra.mxu1 %v1832_v48 }
 0x183   : > { %1715 = vmatprep.subr.bf16.mxu1 %v1932_v1 }
 0x24c   : > { %v583_v22 = vpop.f32.mrb[0].mxu1 }
 0x24d   : > { %v1683_v23 = vpop.f32.mrb[1].mxu1  ;;  %v590_v24 = vsel %vm589_vm3, %v583_v22, -inf }
 0x24e   : > { %591 = vmax.xlane.f32.xlu1 %v590_v24  ;;  %v586_v25 = vpop.f32.mrb[2].mxu1 }
 0x24f   : > { %v1684_v26 = vpop.f32.mrb[3].mxu1 }
 0x250   : > { %v1834_v26 = vld [vmem:[%s2325_s8] sm:$0xff]  }
 0x254   : > { %v696_v27 = vpop.f32.mrb[4].mxu1 }
 0x255   : > { %v1695_v28 = vpop.f32.mrb[5].mxu1  ;;  %v702_v29 = vsel %vm589_vm3, %v696_v27, -inf }
 0x256   : > { %703 = vmax.xlane.f32.xlu0 %v702_v29  ;;  %v699_v30 = vpop.f32.mrb[6].mxu1 }
 0x257   : > { %v1696_v31 = vpop.f32.mrb[7].mxu1 }
 0x25f   : > { %712 = vrot.lane.b32.xlu1 %v538_v13, %s1937_s27  ;;  %s456_s27 = sand.u32 1, %s1922_s30  }
 0x260   : > { %s1475_s0 = scalar_lea.sflag [#allocation5], %s456_s27 }
 0x26c   : > { %600 = vrot.lane.b32.xlu0 %v538_v13, %s1938_s28  ;;  %s1551_s28 = sshll.u32 %s456_s27, 2 }
 0x26d   : > { %s458_s26 = scalar_lea.vmem [#allocation4], %s1551_s28  ;;  %s1872_s28 = sshll.u32 %s1939_s17, 4  ;;  %s1873_s28 = int_to_ptr.vmem [resolvable:$false] %s1872_s28 }
 0x26e   : > { %s1488_s1 = sshll.u32 %s458_s26, 4  ;;  %s1874_s21 = scalar_lea.vmem %s1873_s28, 128  ;;  %s2276_s1 = int_to_ptr.vmem [resolvable:$true] %s1488_s1 }
 0x26f   : > { %s1868_s18 = scalar_lea.vmem %s2276_s1, 64  ;;  %p1875_p0 = scmp.lt.s32.totalorder %s2276_s1, %s1873_s28 }
 0x270   : > { %p1869_p11 = scmp.ne.s32.totalorder %s2276_s1, %s1868_s18  ;;  %p1876_p1 = scmp.lt.s32.totalorder %s1874_s21, %s1868_s18 }
 0x272   : > { %p1870_p12 = pnand %p1869_p11, %p2053_p5  ;;  %p1877_p2 = por %p1876_p1, %p1875_p0 }
 0x274   : > { %p1871_p13 = pneg %p1870_p12 }
 0x276   : > { %p1878_p3 = pnand %p1877_p2, %p1871_p13 }
 0x2db   : > { %v592_v32 = vpop.xlane.xlu1 %591 }
 0x2dc   : > { %v593_v33 = vsub.f32 %v583_v22, %v592_v32  ;;  %v1566_v32 = vld [vmem:[%s2323_s6] ss:$0 sm:$0xff] }
 0x2de   : > { %v594_v34 = vmul.f32 1.442695, %v593_v33 }
 0x2df   : > { %v713_v41 = vpop.permute.xlu1 %712 }
 0x2e0   : > { %1856 = vpow2.f32 %v594_v34  ;;  %v718_v44 = vsel %vm605_vm4, %v713_v41, 0  ;;  %v1567_v34 = vld [vmem:[%s2324_s7] ss:$0 sm:$0xff] }
 0x2e1   : > { %v934_v41 = vld [vmem:[#allocation2] sm:$0xf] }
 0x2e3   : > { %v704_v35 = vpop.xlane.xlu0 %703 }
 0x2e4   : > { %v705_v36 = vsub.f32 %v696_v27, %v704_v35  ;;  %v1835_v27 = vld [vmem:[%s2325_s8 + $0x8] sm:$0xff]  }
 0x2e6   : > { %v706_v37 = vmul.f32 1.442695, %v705_v36 }
 0x2e7   : > { %v601_v38 = vpop.permute.xlu0 %600 }
 0x2e8   : > { %1858 = vpow2.f32 %v706_v37  ;;  %v607_v39 = vsel %vm605_vm4, %v601_v38, 0 }
 0x2e9   : > { %1686 = vmatpush3.bf16.msra.mxu0 %v607_v39 }
 0x2ea   : > { %v1857_v40 = vpop.eup %1856  ;;  %1697 = vmatprep.subr.bf16.mxu0 %v1932_v1 }
 0x2eb   : > { %v596_v42 = vsel %vm589_vm3, %v1857_v40, 0.0  ;;  %v599_v43 = vpack.c.bf16 %v1857_v40, %v1857_v40 }
 0x2ec   : > { %597 = vadd.xlane.f32.xlu1 %v596_v42 }
 0x2ed   : > { %1688 = vmatmul.mubr.msk.bf16.vlgmr.msra.gmra.mrb[4].mxu0 %vm589_vm3, %v599_v43 }
 0x2ee   : > { %1698 = vmatpush3.bf16.msra.mxu0 %v718_v44  ;;  %1699 = vmatprep.mubr.msk.bf16.mxu0 %vm1933_vm0, %v1932_v1 }
 0x2ef   : > { %1709 = vmatprep.subr.bf16.mxu0 %v1932_v1 }
 0x2f2   : > { %v1859_v45 = vpop.eup %1858 }
 0x2f3   : > { %v708_v46 = vsel %vm589_vm3, %v1859_v45, 0.0  ;;  %v711_v47 = vpack.c.bf16 %v1859_v45, %v1859_v45 }
 0x2f4   : > { %709 = vadd.xlane.f32.xlu0 %v708_v46 }
 0x2f5   : > { %1700 = vmatmul.mubr.msk.bf16.vlgmr.msra.gmra.mrb[8].mxu0 %vm589_vm3, %v711_v47  ;;  %v1836_v47 = vld [vmem:[%s2325_s8 + $0x10] sm:$0xff]   ;;  %vm1223_vm3 = vcmask 523264  }
 0x2f6   : > { %1711 = vmatprep.mubr.msk.bf16.mxu0 %vm1933_vm0, %v1932_v1  ;;  %1710 = vmatpush3.bf16.msra.mxu0 %v1833_v49 }
 0x2f7   : > { %1739 = vmatprep.subr.bf16.mxu0 %v1932_v1 }
 0x379   : > { %v598_v50 = vpop.xlane.xlu1 %597 }
 0x37a   : > { %1860 = vrcp.f32 %v598_v50 }
 0x381   : > { %v710_v51 = vpop.xlane.xlu0 %709 }
 0x382   : > { %1862 = vrcp.f32 %v710_v51 }
 0x384   : > { %v1861_v52 = vpop.eup %1860 }
 0x38c   : > { %v1863_v59 = vpop.eup %1862 }
 0x3c0   : > { %v643_v53 = vpop.f32.mrb[4].mxu0 }
 0x3c1   : > { %v650_v54 = vmul.f32 %v1861_v52, %v643_v53  ;;  %v1689_v55 = vpop.f32.mrb[5].mxu0  ;;  %v1837_v52 = vld [vmem:[%s2325_s8 + $0x18] sm:$0xff]  }
 0x3c2   : > { %v646_v56 = vpop.f32.mrb[6].mxu0 }
 0x3c3   : > { %v774_v57 = vpack.c.bf16 %v650_v54, %v650_v54  ;;  %v1690_v58 = vpop.f32.mrb[7].mxu0  ;;  %v1839_v56 = vld [vmem:[%s2325_s8 + $0x20] sm:$0xff]  }
 0x3c4   : > { %v1840_v58 = vld [vmem:[%s2325_s8 + $0x28] sm:$0xff]  }
 0x3c5   : > { %1706 = vmatmul.mubr.msk.bf16.vlgmr.msra.gmra.mrb[8].mxu1 %vm542_vm2, %v774_v57 }
 0x3c6   : > { %1719 = vmatprep.mubr.msk.bf16.mxu1 %vm1933_vm0, %v1932_v1  ;;  %1716 = vmatpush3.bf16.msra.mxu1 %v1834_v26 }
 0x3c7   : > { %1717 = vmatprep.subr.bf16.mxu1 %v1932_v1 }
 0x3c8   : > { %v754_v60 = vpop.f32.mrb[8].mxu0 }
 0x3c9   : > { %v761_v61 = vmul.f32 %v1863_v59, %v754_v60  ;;  %v1701_v62 = vpop.f32.mrb[9].mxu0 }
 0x3ca   : > { %v757_v63 = vpop.f32.mrb[10].mxu0  ;;  %1718 = vmatpush3.bf16.msra.mxu1 %v1835_v27  ;;  %v1153_v62 = vld [vmem:[#allocation3] sm:$0x1] }
 0x3cb   : > { %v825_v0 = vpack.c.bf16 %v761_v61, %v761_v61  ;;  %v1702_v2 = vpop.f32.mrb[11].mxu0  ;;  %1723 = vmatprep.subr.bf16.mxu1 %v1932_v1  ;;  %v1157_v63 = vld [vmem:[#allocation3 + $0x4] sm:$0x1] }
 0x3cc   : > { %v1154_v2 = vsel %vm2193_vm13, 0, %v1153_v62 }
 0x3cd   : > { %1712 = vmatmul.mubr.msk.bf16.vlgmr.msra.gmra.mrb[12].mxu0 %vm542_vm2, %v825_v0  ;;  %1155 = vst [vmem:[#allocation3] sm:$0x1] %v1154_v2  ;;  %vm1175_vm2 = vmand %vm1174_vm15, %vm913_vm7 }
 0x3ce   : > { %1747 = vmatprep.mubr.msk.bf16.mxu0 %vm1933_vm0, %v1932_v1 }
 0x498   : > { %v818_v3 = vpop.f32.mrb[8].mxu1 }
 0x499   : > { %v1707_v4 = vpop.f32.mrb[9].mxu1  ;;  %v824_v9 = vadd.f32 %v1561_v8, %v818_v3  ;;  %v1842_v3 = vld [vmem:[%s2327_s10] sm:$0xff]   ;;  %v1845_v8 = vld [vmem:[%s2327_s10 + $0x10] sm:$0xff]  }
 0x49a   : > { %v821_v5 = vpop.f32.mrb[10].mxu1  ;;  %v1158_v4 = vsel %vm1156_vm14, 0, %v1157_v63  ;;  %1740 = vmatpush3.bf16.msra.mxu0 %v1842_v3 }
 0x49b   : > { %v1708_v7 = vpop.f32.mrb[11].mxu1  ;;  %1159 = vst [vmem:[#allocation3 + $0x4] sm:$0x1] %v1158_v4  ;;  %1741 = vmatprep.subr.bf16.mxu0 %v1932_v1  ;;  %v1843_v5 = vld [vmem:[%s2327_s10 + $0x8] sm:$0xff]  }
 0x49c   : > { %v1844_v7 = vld [vmem:[%s2327_s10 + $0x40] sm:$0xff]  }
 0x49e   : > { %1742 = vmatpush3.bf16.msra.mxu0 %v1843_v5 }
 0x49f   : > { %1743 = vmatprep.subr.bf16.mxu0 %v1932_v1 }
 0x4a0   : > { %v869_v10 = vpop.f32.mrb[12].mxu0 }
 0x4a1   : > { %v875_v11 = vadd.f32 %v869_v10, %v824_v9  ;;  %v1713_v12 = vpop.f32.mrb[13].mxu0  ;;  %v1846_v9 = vld [vmem:[%s2327_s10 + $0x48] sm:$0xff]   ;;  %v1847_v10 = vld [vmem:[%s2327_s10 + $0x18] sm:$0xff]  }
 0x4a2   : > { %v872_v13 = vpop.f32.mrb[14].mxu0  ;;  %1744 = vmatpush3.bf16.msra.mxu0 %v1845_v8  ;;  %v1850_v12 = vld [vmem:[%s2327_s10 + $0x58] sm:$0xff]  }
 0x4a3   : > { %v1714_v14 = vpop.f32.mrb[15].mxu0  ;;  %v876_v15 = vadd.f32 %v875_v11, %v2085_v6  ;;  %v916_v6 = vsel %vm914_vm9, 0, %v915_v19  ;;  %1745 = vmatprep.subr.bf16.mxu0 %v1932_v1  ;;  %v1848_v11 = vld [vmem:[%s2327_s10 + $0x50] sm:$0xff]   ;;  %v1569_v13 = vld [vmem:[%s2326_s9] ss:$0 sm:$0xff] }
 0x4a4   : > { %917 = vst [vmem:[#allocation2 + $0x4] sm:$0x1] %v916_v6 }
 0x4a5   : > { %v879_v16 = vsel %vm492_vm1, %v876_v15, 0.0 }
 0x4a6   : > { %880 = vadd.xlane.f32.xlu0 %v879_v16  ;;  %1746 = vmatpush3.bf16.msra.mxu0 %v1847_v10  ;;  %v1625_v10 = vld [vmem:[%s2330_s13] ss:$0 sm:$0xff] }
 0x4a7   : > { %1751 = vmatprep.subr.bf16.mxu0 %v1932_v1 }
 0x4ab   : > { %v937_v42 = vld [vmem:[#allocation2 + $0x4] sm:$0x1] }
 0x533   : > { %v881_v21 = vpop.xlane.xlu0 %880 }
 0x534   : > { %v883_v22 = vmul.f32 0.03125, %v881_v21 }
 0x536   : > { %v884_v23 = vsub.f32 %v876_v15, %v883_v22 }
 0x538   : > { %v885_v24 = vmul.f32 %v884_v23, %v884_v23 }
 0x53a   : > { %v886_v25 = vsel %vm492_vm1, %v885_v24, 0.0  ;;  %v1179_v24 = vld [vmem:[#allocation3 + $0x4] sm:$0x1] }
 0x53b   : > { %887 = vadd.xlane.f32.xlu1 %v886_v25 }
 0x5c8   : > { %v888_v28 = vpop.xlane.xlu1 %887 }
 0x5c9   : > { %v889_v29 = vmul.f32 0.03125, %v888_v28 }
 0x5cb   : > { %v890_v30 = vadd.f32 1e-05, %v889_v29  ;;  %v1849_v29 = vld [vmem:[%s2327_s10 + $0x20] sm:$0xff]  }
 0x5cd   : > { %1864 = vrsqrt.f32 %v890_v30 }
 0x5d7   : > { %v1865_v31 = vpop.eup %1864 }
 0x5d8   : > { %v892_v33 = vmul.f32 %v1865_v31, %v884_v23  ;;  %v1176_v23 = vld [vmem:[#allocation3] sm:$0xf] }
 0x5da   : > { %v899_v35 = vmul.f32 %v1566_v32, %v892_v33 }
 0x5dc   : > { %v2159_v36 = vadd.f32 %v1567_v34, %v899_v35  ;;  %v1851_v34 = vld [vmem:[%s2327_s10 + $0x28] sm:$0xff]  }
 0x5de   : > { %v1630_v37 = vpack.c.bf16 %v2159_v36, %v2159_v36 }
 0x5e0   : > { %v923_v38 = vshrl.u32 %v1630_v37, 16  ;;  %v926_v40 = vshll.u32 %v1630_v37, 16 }
 0x5e2   : > { %v925_v39 = vrot.slane %v923_v38, 7 }
 0x5e4   : > { %v928_v43 = vor.u32 %v926_v40, %v925_v39  ;;  %v929_v44 = vrot.slane %v925_v39, 4  ;;  %v1854_v39 = vld [vmem:[%s2327_s10 + $0x30] sm:$0xff]  }
 0x5e6   : > { %v935_v45 = vsel %vm933_vm11, %v928_v43, %v934_v41  ;;  %v938_v46 = vsel %vm2137_vm8, %v929_v44, %v937_v42  ;;  %v1855_v41 = vld [vmem:[%s2327_s10 + $0x38] sm:$0xff]  }
 0x5e7   : > { %936 = vst [vmem:[#allocation2] sm:$0xf] %v935_v45  ;;  %939 = vst [vmem:[#allocation2 + $0x4] sm:$0x1] %v938_v46 }
 0x5ee   : > { %v948_v48 = vld [vmem:[#allocation2] sm:$0xf]  ;;  %v1010_v50 = vld [vmem:[#allocation2 + $0x4] sm:$0x1] }
 0x5ef   : > { %v1009_v49 = vld [vmem:[#allocation2] sm:$0xf]  ;;  %1720 = vmatmul.mubr.msk.bf16.vlgmr.msra.gmra.mrb[12].mxu1 %vm492_vm1, %v948_v48 }
 0x5f0   : > { %v1577_v51 = vcombine.low %v1009_v49, %v1010_v50  ;;  %1724 = vmatpush3.bf16.msra.mxu1 %v1836_v47  ;;  %1727 = vmatprep.mubr.msk.bf16.mxu1 %vm1933_vm0, %v1932_v1  ;;  %v1084_v59 = vld [vmem:[#allocation2] sm:$0xe] }
 0x5f1   : > { %1725 = vmatprep.subr.bf16.mxu1 %v1932_v1  ;;  %v1585_v60 = vcombine.low %v1084_v59, %v1010_v50 }
 0x5f2   : > { %v1024_v53 = vshll.u32 %v1577_v51, 16  ;;  %v1022_v55 = vshrl.u32 %v1577_v51, 16 }
 0x5f3   : > { %v1093_v61 = vrot.slane %v1585_v60, 1 }
 0x5f4   : > { %1726 = vmatpush3.bf16.msra.mxu1 %v1837_v52  ;;  %v1026_v54 = vrot.slane %v1024_v53, 1  ;;  %v1590_v53 = vld [vmem:[%s2328_s11] ss:$0 sm:$0xff] }
 0x5f5   : > { %1731 = vmatprep.subr.bf16.mxu1 %v1932_v1 }
 0x5f6   : > { %v1027_v57 = vor.u32 %v1026_v54, %v1022_v55 }
 0x5fb   : > { %1728 = vmatmul.mubr.msk.bf16.vlgmr.msra.gmra.mrb[12].mxu1 %vm492_vm1, %v1027_v57 }
 0x5fc   : > { %1732 = vmatpush3.bf16.msra.mxu1 %v1839_v56  ;;  %1735 = vmatprep.mubr.msk.bf16.mxu1 %vm1933_vm0, %v1932_v1 }
 0x5fd   : > { %1733 = vmatprep.subr.bf16.mxu1 %v1932_v1 }
 0x600   : > { %1734 = vmatpush3.bf16.msra.mxu1 %v1840_v58 }
 0x601   : > { %1763 = vmatprep.subr.bf16.mxu1 %v1932_v1 }
 0x607   : > { %1736 = vmatmul.mubr.msk.bf16.vlgmr.msra.gmra.mrb[12].mxu1 %vm492_vm1, %v1093_v61 }
 0x608   : > { %1771 = vmatprep.mubr.msk.bf16.mxu1 %vm1933_vm0, %v1932_v1  ;;  %1764 = vmatpush3.bf16.msra.mxu1 %v1844_v7 }
 0x609   : > { %1765 = vmatprep.subr.bf16.mxu1 %v1932_v1 }
 0x60c   : > { %1766 = vmatpush3.bf16.msra.mxu1 %v1846_v9 }
 0x60d   : > { %1767 = vmatprep.subr.bf16.mxu1 %v1932_v1 }
 0x610   : > { %1768 = vmatpush3.bf16.msra.mxu1 %v1848_v11 }
 0x611   : > { %1769 = vmatprep.subr.bf16.mxu1 %v1932_v1 }
 0x614   : > { %1770 = vmatpush3.bf16.msra.mxu1 %v1850_v12 }
 0x6da   : > { %v1143_v14 = vpop.f32.mrb[12].mxu1 }
 0x6db   : > { %v1775_v15 = vadd.f32 %v1569_v13, %v1143_v14  ;;  %v1737_v16 = vpop.f32.mrb[13].mxu1 }
 0x6dc   : > { %v1146_v17 = vpop.f32.mrb[14].mxu1 }
 0x6dd   : > { %v1150_v18 = vmax.f32 %v1775_v15, 0.0  ;;  %v1738_v19 = vpop.f32.mrb[15].mxu1 }
 0x6df   : > { %v1631_v20 = vpack.c.bf16 %v1150_v18, %v1150_v18 }
 0x6e1   : > { %v1165_v6 = vshrl.u32 %v1631_v20, 16  ;;  %v1168_v22 = vshll.u32 %v1631_v20, 16 }
 0x6e3   : > { %v1167_v21 = vrot.slane %v1165_v6, 7 }
 0x6e5   : > { %v1170_v25 = vor.u32 %v1168_v22, %v1167_v21  ;;  %v1171_v26 = vrot.slane %v1167_v21, 4 }
 0x6e7   : > { %v1177_v27 = vsel %vm1175_vm2, %v1170_v25, %v1176_v23  ;;  %v1180_v28 = vsel %vm2193_vm13, %v1171_v26, %v1179_v24 }
 0x6e8   : > { %1178 = vst [vmem:[#allocation3] sm:$0xf] %v1177_v27  ;;  %1181 = vst [vmem:[#allocation3 + $0x4] sm:$0x1] %v1180_v28 }
 0x6ef   : > { %v1190_v30 = vld [vmem:[#allocation3] sm:$0xf]  ;;  %v1269_v32 = vld [vmem:[#allocation3 + $0x4] sm:$0x1] }
 0x6f0   : > { %v1268_v31 = vld [vmem:[#allocation3] sm:$0xf]  ;;  %1748 = vmatmul.mubr.msk.bf16.vlgmr.msra.gmra.mrb[16].mxu0 %vm1223_vm3, %v1190_v30 }
 0x6f1   : > { %v1359_v33 = vld [vmem:[#allocation3] sm:$0xe]  ;;  %1752 = vmatpush3.bf16.msra.mxu0 %v1849_v29  ;;  %1759 = vmatprep.mubr.msk.bf16.mxu0 %vm1933_vm0, %v1932_v1  ;;  %v1604_v37 = vcombine.low %v1268_v31, %v1269_v32 }
 0x6f2   : > { %v1618_v35 = vcombine.low %v1359_v33, %v1269_v32  ;;  %1753 = vmatprep.subr.bf16.mxu0 %v1932_v1 }
 0x6f3   : > { %v1287_v40 = vshll.u32 %v1604_v37, 16  ;;  %v1285_v43 = vshrl.u32 %v1604_v37, 16 }
 0x6f4   : > { %v1372_v38 = vrot.slane %v1618_v35, 1 }
 0x6f5   : > { %1754 = vmatpush3.bf16.msra.mxu0 %v1851_v34  ;;  %v1289_v42 = vrot.slane %v1287_v40, 1 }
 0x6f6   : > { %1772 = vmatmul.mubr.msk.bf16.vlgmr.msra.gmra.mrb[16].mxu1 %vm1223_vm3, %v1372_v38  ;;  %1755 = vmatprep.subr.bf16.mxu0 %v1932_v1 }
 0x6f7   : > { %v1290_v44 = vor.u32 %v1289_v42, %v1285_v43 }
 0x6f9   : > { %1756 = vmatpush3.bf16.msra.mxu0 %v1854_v39 }
 0x6fa   : > { %1757 = vmatprep.subr.bf16.mxu0 %v1932_v1 }
 0x6fd   : > { %1758 = vmatpush3.bf16.msra.mxu0 %v1855_v41 }
 0x700   : > { %1760 = vmatmul.mubr.msk.bf16.vlgmr.msra.gmra.mrb[20].mxu0 %vm1223_vm3, %v1290_v44 }
 0x7c3   : > { %v1261_v45 = vpop.f32.mrb[16].mxu0 }
 0x7c4   : > { %v1749_v46 = vpop.f32.mrb[17].mxu0  ;;  %v1267_v54 = vadd.f32 %v1590_v53, %v1261_v45 }
 0x7c5   : > { %v1264_v47 = vpop.f32.mrb[18].mxu0 }
 0x7c6   : > { %v1750_v48 = vpop.f32.mrb[19].mxu0 }
 0x7c9   : > { %v1434_v49 = vpop.f32.mrb[16].mxu1 }
 0x7ca   : > { %v1773_v50 = vpop.f32.mrb[17].mxu1 }
 0x7cb   : > { %v1437_v51 = vpop.f32.mrb[18].mxu1 }
 0x7cc   : > { %v1774_v52 = vpop.f32.mrb[19].mxu1 }
 0x7d3   : > { %v1352_v1 = vpop.f32.mrb[20].mxu0 }
 0x7d4   : > { %v1358_v55 = vadd.f32 %v1352_v1, %v1267_v54  ;;  %v1761_v56 = vpop.f32.mrb[21].mxu0 }
 0x7d5   : > { %v1355_v57 = vpop.f32.mrb[22].mxu0 }
 0x7d6   : > { %v1440_v58 = vadd.f32 %v1434_v49, %v1358_v55  ;;  %v1762_v59 = vpop.f32.mrb[23].mxu0 }
 0x7d8   : > { %v1441_v60 = vadd.f32 %v1440_v58, %v2159_v36  ;;  %v1624_v36 = vld [vmem:[%s2329_s12] ss:$0 sm:$0xff] }
 0x7da   : > { %v1444_v61 = vsel %vm492_vm1, %v1441_v60, 0.0 }
 0x7db   : > { %1445 = vadd.xlane.f32.xlu0 %v1444_v61 }
 0x868   : > { %v1446_v62 = vpop.xlane.xlu0 %1445 }
 0x869   : > { %v1447_v63 = vmul.f32 0.03125, %v1446_v62 }
 0x86b   : > { %v1448_v0 = vsub.f32 %v1441_v60, %v1447_v63 }
 0x86d   : > { %v1449_v2 = vmul.f32 %v1448_v0, %v1448_v0 }
 0x86f   : > { %v1450_v3 = vsel %vm492_vm1, %v1449_v2, 0.0 }
 0x870   : > { %1451 = vadd.xlane.f32.xlu1 %v1450_v3 }
 0x8fd   : > { %v1452_v4 = vpop.xlane.xlu1 %1451 }
 0x8fe   : > { %v1453_v5 = vmul.f32 0.03125, %v1452_v4 }
 0x900   : > { %v1454_v7 = vadd.f32 1e-05, %v1453_v5 }
 0x902   : > { %1866 = vrsqrt.f32 %v1454_v7 }
 0x90c   : > { %v1867_v8 = vpop.eup %1866 }
 0x90d   : > { %v1456_v9 = vmul.f32 %v1867_v8, %v1448_v0 }
 0x90f   : > { %v1463_v11 = vmul.f32 %v1624_v36, %v1456_v9 }
 0x911   : > { %v1470_v12 = vadd.f32 %v1625_v10, %v1463_v11 }
 0x913   : > { %v1471_v13 = vpack.c.bf16 %v1470_v12, %v1470_v12 }
 0x915   : > { %1473 = vst.msk [vmem:[%s458_s26] sm:$0xf] %vm932_vm10, %v1471_v13 }
 0x916   : > { %1881 = shalt.err (!%p1878_p3)
}
 0x917   : > { %s1882_s2 = scalar_lea.hbm %s2274_s4, 64  ;;  %s1886_s20 = scalar_lea.hbm %s2331_s14, 128 }
 0x918   : > { %p1883_p4 = scmp.ne.s32.totalorder %s2274_s4, %s1882_s2  ;;  %p1887_p9 = scmp.lt.u32.totalorder %s2274_s4, %s2331_s14 }
 0x919   : > { %p1888_p10 = scmp.lt.u32.totalorder %s1886_s20, %s1882_s2  ;;  %p1890_p12 = scmp.lt.u32.totalorder %s1882_s2, %s2274_s4 }
 0x91a   : > { %p1884_p7 = pnand %p1883_p4, %p2053_p5 }
 0x91b   : > { %p1889_p11 = por %p1888_p10, %p1887_p9 }
 0x91c   : > { %p1885_p8 = pneg %p1884_p7 }
 0x91d   : > { %p1891_p13 = por %p1890_p12, %p1889_p11 }
 0x91f   : > { %p1892_p0 = pnand %p1891_p13, %p1885_p8 }
 0x921   : > { %1895 = shalt.err (!%p1892_p0)
}
 0x922   : > { %1784 = dma.vmem_to_hbm [thread:$0]  (%p2053_p5), %s2276_s1, 64, %s2274_s4, %s1475_s0  }
 0x923 PF: > { %p1790_p1 = scmp.ge.s32.totalorder %s1930_s16, 2  ;;  %s1500_s18 = sand.u32 1, %s1918_s29  }
 0x924   : > { %s1501_s17 = scalar_lea.sflag [#allocation5], %s1500_s18 }
 0x925   : > { %p1787_p2 = pnand %p1790_p1, %p2057_p6 }
 0x927   : > { %1913 = dma.done.wait (!%p1787_p2), %s1501_s17, 64  }
 0x928   : > { %1915 = vsyncadd (!%p1787_p2), %s1501_s17, 4294967232  ;;  %p24_p3 = scmp.ge.s32.totalorder %s2040_s19, 4   ;;  %s2348_s29 = smov %s1922_s30 }
 0x929   : > { %s2349_s30 = smov %s1926_s15  ;;  %s2350_s15 = smov %s2051_s22 }
 0x92a   : > { %s2351_s16 = smov %s2040_s19  ;;  %26 = sbr.rel (!%p24_p3) target bundleno = 9 (0x9), region = 115 }
 0x931   :  { %1506 = vsyncpa [#allocation5], 1 }
 0x932   :  { %1508 = vsyncpa [#allocation5 + $0x1], 1 }

</bundles_post_ra>
